<compile_context>
chip_gen: v7x
topology: tpu7x:2x2x1
jax: 0.10.0
libtpu: 0.0.40
codegen_flags: <defaults>
</compile_context>

<pallas_src>
import functools

import jax
import jax.numpy as jnp
from jax import lax
from jax.experimental import pallas as pl
from jax.experimental.pallas import tpu as pltpu


_TARGET_HBM_BLOCK_BYTES = 8 * 1024 * 1024   # logits HBM bytes per grid step
_MAX_VMEM_BLOCK_BYTES = 8 * 1024 * 1024     # lane-padded VMEM per logits buffer
_MAX_TILE_ROWS = 8192                       # bounds labels lane-padding cost
_VMEM_LIMIT_BYTES = 48 * 1024 * 1024        # > scoped defaults, < v7x 64 MiB


def _choose_tile_n(n: int, c: int, dtype) -> int:
    """Row tile: multiple of 8, bounded HBM-block and padded-VMEM footprint."""
    itemsize = jnp.dtype(dtype).itemsize
    c_pad = ((c + 127) // 128) * 128          # lane padding in VMEM
    hbm_row = max(1, c * itemsize)            # bytes actually streamed from HBM
    vmem_row = max(1, c_pad * itemsize)       # bytes resident per row in VMEM
    rows = _TARGET_HBM_BLOCK_BYTES // hbm_row
    rows = min(rows, _MAX_VMEM_BLOCK_BYTES // vmem_row)
    rows = min(rows, _MAX_TILE_ROWS)
    rows = max(8, (rows // 8) * 8)
    if n <= rows:
        return n  # full-dim block (exempt from the (8,128) divisibility rule)
    return rows


def _accuracy_partial_kernel(logits_ref, labels_ref, out_ref, *,
                             n_total, tile_n, upcast_to_f32):
    i = pl.program_id(0)

    logits = logits_ref[...]                               # native dtype DMA
    if upcast_to_f32:
        logits = logits.astype(jnp.float32)                # v5e-only option
    labels = labels_ref[...]                               # (tile_n, 1) int32
    tn, c = logits.shape

    # argmax over classes, first occurrence on ties (PyTorch convention).
    row_max = jnp.max(logits, axis=1, keepdims=True)              # (tn, 1)
    col_ids = lax.broadcasted_iota(jnp.int32, (tn, c), 1)         # (tn, C)
    cand = jnp.where(logits == row_max, col_ids, jnp.int32(c))    # (tn, C)
    preds = jnp.min(cand, axis=1, keepdims=True)                  # (tn, 1)

    # Mask rows of the ragged last block (grid padding beyond n_total).
    row_ids = i * tile_n + lax.broadcasted_iota(jnp.int32, (tn, 1), 0)
    valid = row_ids < n_total
    matches = jnp.where(jnp.logical_and(valid, preds == labels),
                        jnp.int32(1), jnp.int32(0))
    total = jnp.sum(matches)                                       # int32 scalar

    # One lane-dense (8,128) tile per grid step; wrapper reads [:, 0, 0].
    out_ref[...] = jnp.zeros((1, 8, 128), jnp.int32) + total


def accuracy(logits: jax.Array, labels: jax.Array, *,
             tile_n: int | None = None,
             upcast_to_f32: bool = False) -> jax.Array:
    """Pallas-backed equivalent of Accuracy.forward (returns f32 scalar)."""
    assert logits.ndim == 2
    assert labels.ndim == 1
    assert logits.shape[0] == labels.shape[0]
    N, C = logits.shape
    itemsize = jnp.dtype(logits.dtype).itemsize

    if tile_n is None:
        tile_n = _choose_tile_n(N, C, logits.dtype)
    else:
        tile_n = min(int(tile_n), N)
        if tile_n < N:
            tile_n = max(8, (tile_n // 8) * 8)

    num_blocks = pl.cdiv(N, tile_n)
    grid = (num_blocks,)
    labels_2d = labels.astype(jnp.int32).reshape(N, 1)

    kernel = functools.partial(_accuracy_partial_kernel,
                               n_total=N, tile_n=tile_n,
                               upcast_to_f32=upcast_to_f32)

    cost = pl.CostEstimate(
        flops=3 * N * C,
        transcendentals=0,
        bytes_accessed=N * C * itemsize + N * 4 + num_blocks * 8 * 128 * 4,
    )

    counts = pl.pallas_call(
        kernel,
        out_shape=jax.ShapeDtypeStruct((num_blocks, 8, 128), jnp.int32),
        grid_spec=pltpu.PrefetchScalarGridSpec(
            num_scalar_prefetch=0,
            grid=grid,
            in_specs=[
                pl.BlockSpec((tile_n, C), lambda i: (i, 0)),
                pl.BlockSpec((tile_n, 1), lambda i: (i, 0)),
            ],
            out_specs=pl.BlockSpec((1, 8, 128), lambda i: (i, 0, 0)),
        ),
        compiler_params=pltpu.CompilerParams(
            dimension_semantics=("parallel",),
            vmem_limit_bytes=_VMEM_LIMIT_BYTES,
        ),
        cost_estimate=cost,
    )(logits, labels_2d)

    # Exact integer count: sum of per-block partials; divide by N outside.
    total = jnp.sum(counts[:, 0, 0])
    return total.astype(jnp.float32) / jnp.float32(N)


if __name__ == "__main__":
    key = jax.random.PRNGKey(0)
    k1, k2, k3, k4 = jax.random.split(key, 4)

    # Small case (single full-dim block), f32 logits.
    N1, C1 = 8, 32
    logits1 = jax.random.normal(k1, (N1, C1), dtype=jnp.float32)
    labels1 = jax.random.randint(k2, (N1,), 0, C1, dtype=jnp.int32)
    acc1 = jax.block_until_ready(accuracy(logits1, labels1))
    ref1 = jnp.mean(
        (jnp.argmax(logits1, axis=1).astype(jnp.int32) == labels1).astype(jnp.float32)
    )
    assert abs(float(acc1) - float(ref1)) < 1e-6, (float(acc1), float(ref1))

    # Tiled + ragged case in bf16: exercises the parallel N-grid, the row mask
    # on the padded last block, and the native-dtype (bf16) compute path.
    N2, C2 = 300, 160
    logits2 = jax.random.normal(k3, (N2, C2), dtype=jnp.float32).astype(jnp.bfloat16)
    labels2 = jax.random.randint(k4, (N2,), 0, C2, dtype=jnp.int32)
    acc2 = jax.block_until_ready(accuracy(logits2, labels2, tile_n=128))
    ref2 = jnp.mean(
        (jnp.argmax(logits2, axis=1).astype(jnp.int32) == labels2).astype(jnp.float32)
    )
    assert abs(float(acc2) - float(ref2)) < 1e-6, (float(acc2), float(ref2))

    print("KERNEL_OK")
</pallas_src>

<mosaic_0001>
module attributes {stable_mosaic.version = 11 : i64} {
  func.func @_accuracy_partial_kernel(%arg0: i32, %arg1: memref<8x32xf32, #tpu.memory_space<vmem>>, %arg2: memref<8x1xi32, #tpu.memory_space<vmem>>, %arg3: memref<1x8x128xi32, #tpu.memory_space<vmem>>) attributes {dimension_semantics = [#tpu.dimension_semantics<parallel>], iteration_bounds = array<i64: 1>, scalar_prefetch = 0 : i64, scratch_operands = 0 : i64, tpu.core_type = #tpu.core_type<tc>, window_params = [{transform_indices = @transform_0, window_bounds = array<i64: 8, 32>}, {transform_indices = @transform_1, window_bounds = array<i64: 8, 1>}, {transform_indices = @transform_2, window_bounds = array<i64: 1, 8, 128>}]} {
    %c0 = arith.constant 0 : index
    %c0_0 = arith.constant 0 : index
    %0 = vector.load %arg1[%c0, %c0_0] : memref<8x32xf32, #tpu.memory_space<vmem>>, vector<8x32xf32>
    %c0_1 = arith.constant 0 : index
    %c0_2 = arith.constant 0 : index
    %1 = vector.load %arg2[%c0_1, %c0_2] : memref<8x1xi32, #tpu.memory_space<vmem>>, vector<8x1xi32>
    %cst = arith.constant dense<0xFF800000> : vector<8xf32>
    %2 = vector.multi_reduction <maximumf>, %0, %cst [1] : vector<8x32xf32> to vector<8xf32>
    %3 = vector.shape_cast %2 : vector<8xf32> to vector<8x1xf32>
    %4 = tpu.iota {dimensions = array<i32: 1>} : vector<8x32xi32>
    %5 = vector.broadcast %3 : vector<8x1xf32> to vector<8x32xf32>
    %6 = arith.cmpf oeq, %0, %5 : vector<8x32xf32>
    %c32_i32 = arith.constant 32 : i32
    %7 = vector.broadcast %c32_i32 : i32 to vector<8x32xi32>
    %8 = arith.select %6, %4, %7 : vector<8x32xi1>, vector<8x32xi32>
    %cst_3 = arith.constant dense<2147483647> : vector<8xi32>
    %9 = vector.multi_reduction <minsi>, %8, %cst_3 [1] : vector<8x32xi32> to vector<8xi32>
    %10 = vector.shape_cast %9 : vector<8xi32> to vector<8x1xi32>
    %c8_i32 = arith.constant 8 : i32
    %11 = arith.muli %arg0, %c8_i32 : i32
    %12 = tpu.iota {dimensions = array<i32: 0>} : vector<8x1xi32>
    %13 = vector.broadcast %11 : i32 to vector<8x1xi32>
    %14 = arith.addi %13, %12 : vector<8x1xi32>
    %c8_i32_4 = arith.constant 8 : i32
    %15 = vector.broadcast %c8_i32_4 : i32 to vector<8x1xi32>
    %16 = arith.cmpi slt, %14, %15 : vector<8x1xi32>
    %17 = arith.cmpi eq, %10, %1 : vector<8x1xi32>
    %18 = arith.andi %16, %17 : vector<8x1xi1>
    %c1_i32 = arith.constant 1 : i32
    %c0_i32 = arith.constant 0 : i32
    %19 = vector.broadcast %c1_i32 : i32 to vector<8x1xi32>
    %20 = vector.broadcast %c0_i32 : i32 to vector<8x1xi32>
    %21 = arith.select %18, %19, %20 : vector<8x1xi1>, vector<8x1xi32>
    %22 = vector.shape_cast %21 : vector<8x1xi32> to vector<1x8x1xi32>
    %cst_5 = arith.constant dense<0> : vector<1xi32>
    %23 = vector.multi_reduction <add>, %22, %cst_5 [1, 2] : vector<1x8x1xi32> to vector<1xi32>
    %24 = vector.shape_cast %23 : vector<1xi32> to vector<1x1x1xi32>
    %25 = vector.extract %24[0, 0, 0] : i32 from vector<1x1x1xi32>
    %c0_i32_6 = arith.constant 0 : i32
    %26 = vector.broadcast %c0_i32_6 : i32 to vector<1x8x128xi32>
    %27 = vector.broadcast %25 : i32 to vector<1x8x128xi32>
    %28 = arith.addi %26, %27 : vector<1x8x128xi32>
    %c0_7 = arith.constant 0 : index
    %c0_8 = arith.constant 0 : index
    %c0_9 = arith.constant 0 : index
    %29 = vector.load %arg3[%c0_7, %c0_8, %c0_9] : memref<1x8x128xi32, #tpu.memory_space<vmem>>, vector<1x8x128xi32>
    tpu.vector_store %arg3[%c0_7, %c0_8, %c0_9], %28 {strides = array<i32>} : memref<1x8x128xi32, #tpu.memory_space<vmem>>, vector<1x8x128xi32>,
    return
  }
  func.func @transform_0(%arg0: i32) -> (i32, i32) {
    %c0_i32 = arith.constant 0 : i32
    %c0_i32_0 = arith.constant 0 : i32
    return %arg0, %c0_i32 : i32, i32
  }
  func.func @transform_1(%arg0: i32) -> (i32, i32) {
    %c0_i32 = arith.constant 0 : i32
    %c0_i32_0 = arith.constant 0 : i32
    return %arg0, %c0_i32 : i32, i32
  }
  func.func @transform_2(%arg0: i32) -> (i32, i32, i32) {
    %c0_i32 = arith.constant 0 : i32
    %c0_i32_0 = arith.constant 0 : i32
    %c0_i32_1 = arith.constant 0 : i32
    return %arg0, %c0_i32, %c0_i32_0 : i32, i32, i32
  }
}

</mosaic_0001>

<bundles_post_ra>
// kernel: tpu_custom_call.1
= control target key start
LH: loop header
LB: loop body
LE: loop exit
PB: predicated region body
PF: predicated region fallthrough
CT: control target
= control target key end

     0   :  { %vm14_vm0 = vcmask 261120   ;;  %s146_s0 = inlined_call_operand.vmem [shape: f32[8,32], index: 0, kind: input, shape index: {}]   ;;  %s147_s1 = inlined_call_operand.vmem [shape: s32[8,1], index: 1, kind: input, shape index: {}]   ;;  %s148_s2 = inlined_call_operand.hbm [shape: s32[1,8,128], index: 2, kind: output, shape index: {}]  }
   0x1   :  { %v12_v0 = vld [vmem:[%s146_s0] sm:$0xff] }
   0x2   :  { %7 = vsyncpa [#allocation3], 0  ;;  %v15_v1 = vsel %vm14_vm0, %v12_v0, -inf  ;;  %v18_v2 = vlaneseq  ;;  %v13_v17 = vld [vmem:[%s147_s1] sm:$0xff]  ;;  %vm46_vm3 = vcmask 7168   ;;  %v111_v19 = vmov 0  }
   0x3   :  { %16 = vmax.xlane.f32.xlu0 %v15_v1  ;;  %s112_s1 = smov [#allocation2]  }
   0x4   :  { %v19_v3 = vand.u32 127, %v18_v2  ;;  %s75_s12 = sshll.u32 %s112_s1, 4  ;;  %s76_s12 = int_to_ptr.vmem [resolvable:$true] %s75_s12 }
   0x5   :  { %s87_s14 = scalar_lea.vmem %s76_s12, 128  ;;  %p92_p1 = scmp.lt.s32.totalorder %s76_s12, %s76_s12 }
   0x6   :  { %p88_p0 = scmp.ne.s32.totalorder %s76_s12, %s87_s14  ;;  %p93_p2 = scmp.lt.s32.totalorder %s87_s14, %s87_s14 }
   0x8   :  { %p94_p3 = por %p93_p2, %p92_p1 }
   0xa   :  { %p95_p4 = pnand %p94_p3, %p88_p0 }
  0x90   :  { %v17_v4 = vpop.xlane.xlu0 %16 }
  0x91   :  { %vm20_vm1 = vcmp.eq.f32.partialorder %v12_v0, %v17_v4 }
  0x92   :  { %v21_v5 = vsel %vm20_vm1, %v19_v3, 32 }
  0x93   :  { %v22_v6 = vsel %vm14_vm0, %v21_v5, 2147483647 }
  0x94   :  { %v24_v7 = vshra.s32 %v22_v6, 16  ;;  %v23_v9 = vand.u32 65535, %v22_v6 }
  0x96   :  { %v26_v8 = vcvt.s32.f32 %v24_v7  ;;  %v25_v11 = vcvt.s32.f32 %v23_v9 }
  0x98   :  { %27 = vmin.xlane.f32.xlu0 %v26_v8 }
 0x125   :  { %v28_v10 = vpop.xlane.xlu0 %27 }
 0x126   :  { %vm29_vm2 = vcmp.eq.f32.partialorder %v26_v8, %v28_v10  ;;  %v34_v13 = vcvt.f32.s32 %v28_v10 }
 0x127   :  { %v30_v12 = vsel %vm29_vm2, %v25_v11, inf }
 0x128   :  { %31 = vmin.xlane.f32.xlu1 %v30_v12  ;;  %v35_v15 = vshll.u32 %v34_v13, 16 }
 0x1b5   :  { %v32_v14 = vpop.xlane.xlu1 %31 }
 0x1b6   :  { %v33_v16 = vcvt.f32.s32 %v32_v14 }
 0x1b8   :  { %v36_v18 = vadd.s32 %v35_v15, %v33_v16 }
 0x1ba   :  { %vm43_vm4 = vcmp.eq.s32.totalorder %v36_v18, %v13_v17 }
 0x1bb   :  { %v45_v20 = vsel %vm43_vm4, 1, %v111_v19 }
 0x1bc   :  { %v47_v21 = vsel %vm46_vm3, %v45_v20, 0 }
 0x1bd   :  { %v49_v22 = vshrl.u32 %v47_v21, 16  ;;  %v48_v23 = vand.u32 65535, %v47_v21 }
 0x1bf   :  { %v51_v24 = vcvt.s32.f32 %v49_v22  ;;  %v50_v25 = vcvt.s32.f32 %v48_v23 }
 0x1c1   :  { %54 = vadd.xlane.f32.xlu1 %v51_v24  ;;  %52 = vadd.xlane.f32.xlu0 %v50_v25 }
 0x24e   :  { %v55_v26 = vpop.xlane.xlu1 %54  ;;  %v53_v27 = vpop.xlane.xlu0 %52 }
 0x24f   :  { %v57_v28 = vcvt.f32.s32 %v55_v26  ;;  %v56_v30 = vcvt.f32.s32 %v53_v27 }
 0x251   :  { %v58_v29 = vshll.u32 %v57_v28, 16 }
 0x253   :  { %v59_v31 = vadd.s32 %v58_v29, %v56_v30 }
 0x255   :  { %v60_v32 = vrot.slane %v59_v31, 4 }
 0x257   :  { %v61_v33 = vadd.s32 %v60_v32, %v59_v31 }
 0x259   :  { %v62_v34 = vrot.slane %v61_v33, 2 }
 0x25b   :  { %v63_v35 = vadd.s32 %v62_v34, %v61_v33 }
 0x25d   :  { %v64_v36 = vrot.slane %v63_v35, 1 }
 0x25f   :  { %v65_v37 = vadd.s32 %v64_v36, %v63_v35 }
 0x261   :  { %83 = vpush %v65_v37 }
 0x292   :  { %s84_s13 = spop %83 }
 0x293   :  { %v67_v38 = vstv %s84_s13 }
 0x294   :  { %68 = vst [vmem:[#allocation2] sm:$0xff] %v67_v38 }
 0x295   :  { %98 = shalt.err (!%p95_p4)
}
 0x296   :  { %s99_s17 = scalar_lea.hbm %s148_s2, 128 }
 0x297   :  { %p100_p5 = scmp.ne.s32.totalorder %s148_s2, %s99_s17  ;;  %p103_p6 = scmp.lt.u32.totalorder %s99_s17, %s148_s2 }
 0x299   :  { %p105_p7 = pnand %p103_p6, %p100_p5 }
 0x29b   :  { %108 = shalt.err (!%p105_p7)
}
 0x29c   :  { %78 = dma.vmem_to_hbm [thread:$0]  %s76_s12, 128, %s148_s2, [#allocation3]  }
 0x29d   :  { %109 = dma.done.wait [#allocation3], 128  }
 0x29e   :  { %110 = vsyncadd [#allocation3], 4294967168 }
 0x29f   :  { %82 = vsyncpa [#allocation3], 1 }

</bundles_post_ra>
